<compile_context>
chip_gen: v7x
topology: tpu7x:2x2x1
jax: 0.10.0
libtpu: 0.0.40
codegen_flags: <defaults>
</compile_context>

<pallas_src>
import functools

import jax
import jax.numpy as jnp
from jax.experimental import pallas as pl
from jax.experimental.pallas import tpu as pltpu


_LANE = 128
_TILE_BYTES = 2 * 1024 * 1024   # target lane-padded f32 bytes per (TN, TC) working tile
_MAX_ROWS = 4096                # cap on TN: bounds (TN,1) column-vector footprint / spill
_MAX_COLS = 4096                # class-tile width once C gets tiled


def _round_down(x, m):
    return (x // m) * m


def _focal_from_stats(x_t, m, s, gamma):
    """Per-row focal loss from raw target logit x_t, row max m, sum exp(x - m)."""
    lse = m + jnp.log(s)                      # logsumexp of the row          (TN, 1)
    log_p_t = x_t - lse                       # log softmax at target class   (TN, 1)
    p_t = jnp.exp(log_p_t)
    om = jnp.clip(1.0 - p_t, 0.0, 1.0)        # guard pow against p_t > 1 rounding
    g = float(gamma)
    if g.is_integer() and 0.0 <= g <= 8.0:    # default gamma=2 -> VPU multiplies only
        mod = jnp.ones_like(om)
        for _ in range(int(g)):
            mod = mod * om
    else:
        mod = om ** g                         # generic (EUP) path
    return -(mod * log_p_t)                   # (TN, 1)


def _focal_kernel_single(x_ref, t_ref, o_ref, *, gamma):
    # Whole class dim in one block.
    # x_ref: (TN, C) logits; t_ref: (TN, 1) int32 targets; o_ref: (1, TN) f32.
    x = x_ref[...].astype(jnp.float32)
    tgt = t_ref[...]
    tn, c = x.shape
    cls = jax.lax.broadcasted_iota(jnp.int32, (tn, c), 1)

    m = jnp.max(x, axis=-1, keepdims=True)                                 # (TN, 1)
    s = jnp.sum(jnp.exp(x - m), axis=-1, keepdims=True)                    # (TN, 1)
    # Gather raw target logit (select + lane reduce); max subtracted later.
    x_t = jnp.sum(jnp.where(cls == tgt, x, 0.0), axis=-1, keepdims=True)   # (TN, 1)

    loss = _focal_from_stats(x_t, m, s, gamma)     # (TN, 1)
    o_ref[...] = loss[:, 0][None, :]               # lane-dense (1, TN) store


def _focal_kernel_ctiled(x_ref, t_ref, o_ref, m_sc, s_sc, xt_sc, *,
                         gamma, num_classes, block_cols):
    # Online logsumexp over class tiles; grid = (row_steps, c_steps), c innermost.
    j = pl.program_id(1)

    @pl.when(j == 0)
    def _init():
        m_sc[...] = jnp.full_like(m_sc, -jnp.inf)
        s_sc[...] = jnp.zeros_like(s_sc)
        xt_sc[...] = jnp.zeros_like(xt_sc)

    x = x_ref[...].astype(jnp.float32)             # (TN, TC)
    tgt = t_ref[...]                               # (TN, 1) int32
    tn, tc = x.shape
    cls = j * block_cols + jax.lax.broadcasted_iota(jnp.int32, (tn, tc), 1)

    if num_classes % block_cols != 0:
        # Mask out-of-range classes of the partial last class block.
        xm = jnp.where(cls < num_classes, x, -jnp.inf)
    else:
        xm = x

    m_prev = m_sc[...]
    m_new = jnp.maximum(m_prev, jnp.max(xm, axis=-1, keepdims=True))
    s_sc[...] = s_sc[...] * jnp.exp(m_prev - m_new) + jnp.sum(
        jnp.exp(xm - m_new), axis=-1, keepdims=True)
    m_sc[...] = m_new
    # Accumulate the raw (unshifted) target-class logit.
    xt_sc[...] = xt_sc[...] + jnp.sum(
        jnp.where(cls == tgt, x, 0.0), axis=-1, keepdims=True)

    @pl.when(j == pl.num_programs(1) - 1)
    def _finalize():
        loss = _focal_from_stats(xt_sc[...], m_sc[...], s_sc[...], gamma)
        o_ref[...] = loss[:, 0][None, :]           # lane-dense (1, TN) store


def _choose_tiles(n_rows, c):
    # Class tile: whole C when it is modest, else fixed-width chunks.
    tc = c if c <= _MAX_COLS else _MAX_COLS
    padded_tc = max(_LANE, ((tc + _LANE - 1) // _LANE) * _LANE)
    # Row tile from a lane-padded f32 byte budget.
    rows = max(_TILE_BYTES // (padded_tc * 4), _LANE)
    tn = max(_LANE, _round_down(rows, _LANE))
    tn = min(tn, _MAX_ROWS)
    # Never let a row block exceed the (128-aligned) batch.
    tn = min(tn, max(_LANE, _round_down(n_rows, _LANE)))
    # v7x megacore: keep >= 2 "parallel" row steps whenever the batch allows it.
    if n_rows >= 2 * _LANE:
        tn = min(tn, max(_LANE, _round_down(n_rows // 2, _LANE)))
    return tn, tc


def _vmem_limit_bytes(tn, tc, itemsize):
    padded_tc = max(_LANE, ((tc + _LANE - 1) // _LANE) * _LANE)
    tile_in = tn * padded_tc * itemsize        # one buffered input block (lane-padded)
    tile_f32 = tn * padded_tc * 4              # one full-tile f32 temporary
    col_f32 = (tn // 8) * 4096                 # one (TN, 1) f32 vector, lane-padded
    est = 2 * tile_in + 3 * tile_f32 + 8 * col_f32 + (1 << 20)
    # Floor at the 32 MiB scoped default; stay well under v7x's 64 MiB physical.
    return int(min(max(est, 32 * 1024 * 1024), 48 * 1024 * 1024))


def focal_loss(logits, targets, gamma=2.0, block_rows=None, block_cols=None):
    """Pallas FocalLoss forward (weight=None, reduction='none').

    logits: (N, C) float, targets: (N,) int with values in [0, C).
    Returns per-sample losses of shape (N,), float32.

    Notes:
      * There is no ignore_index: a target outside [0, C) makes the gathered
        target logit 0, giving an unspecified (not zero) loss for that row.
        Callers must pass valid targets.
      * Rows of the boundary tile past N read unspecified data (may produce
        inf/NaN in discarded lanes); they are never written to the output.
    """
    n, c = logits.shape
    x = logits
    t = targets.astype(jnp.int32)

    # Only a sub-128-row batch gets padded (negligible bytes); larger batches
    # are read unpadded and the partial boundary row-block is handled by Pallas.
    n_rows = n
    if n < _LANE:
        x = jnp.pad(x, ((0, _LANE - n), (0, 0)))
        t = jnp.pad(t, ((0, _LANE - n),))
        n_rows = _LANE

    tn_auto, tc_auto = _choose_tiles(n_rows, c)
    tn = int(block_rows) if block_rows is not None else tn_auto
    tc = int(block_cols) if block_cols is not None else tc_auto
    tn = min(tn, max(_LANE, _round_down(n_rows, _LANE)))
    if tn % _LANE != 0:
        raise ValueError("block_rows must be a multiple of 128")
    if tc < c and tc % _LANE != 0:
        raise ValueError("block_cols must equal C or be a multiple of 128")

    row_steps = pl.cdiv(n_rows, tn)
    c_steps = pl.cdiv(c, tc)
    t2d = t.reshape(n_rows, 1)   # targets per-row in the sublane dim (no relayout)

    itemsize = jnp.dtype(x.dtype).itemsize
    params = pltpu.CompilerParams(
        dimension_semantics=("parallel",) if c_steps == 1
        else ("parallel", "arbitrary"),
        vmem_limit_bytes=_vmem_limit_bytes(tn, min(tc, c), itemsize))

    if c_steps == 1:
        out = pl.pallas_call(
            functools.partial(_focal_kernel_single, gamma=gamma),
            out_shape=jax.ShapeDtypeStruct((1, n_rows), jnp.float32),
            grid=(row_steps,),
            in_specs=[
                pl.BlockSpec((tn, c), lambda i: (i, 0)),    # logits tile
                pl.BlockSpec((tn, 1), lambda i: (i, 0)),    # targets (sublane)
            ],
            out_specs=pl.BlockSpec((1, tn), lambda i: (0, i)),  # lane-dense losses
            compiler_params=params,
        )(x, t2d)
    else:
        out = pl.pallas_call(
            functools.partial(_focal_kernel_ctiled, gamma=gamma,
                              num_classes=c, block_cols=tc),
            out_shape=jax.ShapeDtypeStruct((1, n_rows), jnp.float32),
            grid=(row_steps, c_steps),
            in_specs=[
                pl.BlockSpec((tn, tc), lambda i, j: (i, j)),
                pl.BlockSpec((tn, 1), lambda i, j: (i, 0)),
            ],
            out_specs=pl.BlockSpec((1, tn), lambda i, j: (0, i)),
            scratch_shapes=[pltpu.VMEM((tn, 1), jnp.float32)] * 3,  # m, sumexp, x_t
            compiler_params=params,
        )(x, t2d)

    return out[0, :n]


def _focal_loss_ref(logits, targets, gamma=2.0):
    # Pure-JAX reference mirroring the PyTorch module (weight=None, reduction='none').
    log_prob = jax.nn.log_softmax(logits.astype(jnp.float32), axis=-1)
    prob = jnp.exp(log_prob)
    focal = (1.0 - prob) ** gamma * log_prob
    gathered = jnp.take_along_axis(focal, targets[:, None].astype(jnp.int32), axis=-1)
    return -gathered[:, 0]


if __name__ == "__main__":
    key = jax.random.PRNGKey(0)
    k1, k2, k3, k4, k5, k6 = jax.random.split(key, 6)

    # Case 1: typical small use (8 spans, 32 labels) -> single-C-block path,
    # sub-128-row padding.
    N, C = 8, 32
    logits = jax.random.normal(k1, (N, C), dtype=jnp.float32)
    targets = jax.random.randint(k2, (N,), 0, C, dtype=jnp.int32)
    loss = focal_loss(logits, targets, gamma=2.0)
    jax.block_until_ready(loss)
    ref = _focal_loss_ref(logits, targets, gamma=2.0)
    assert loss.shape == (N,)
    assert jnp.allclose(loss, ref, atol=1e-5, rtol=1e-5), (loss, ref)

    # Case 2: unpadded logits with a partial boundary row-block (N % TN != 0).
    N2, C2 = 300, 160
    logits2 = jax.random.normal(k3, (N2, C2), dtype=jnp.float32)
    targets2 = jax.random.randint(k4, (N2,), 0, C2, dtype=jnp.int32)
    loss2 = focal_loss(logits2, targets2, gamma=2.0)
    jax.block_until_ready(loss2)
    ref2 = _focal_loss_ref(logits2, targets2, gamma=2.0)
    assert loss2.shape == (N2,)
    assert jnp.allclose(loss2, ref2, atol=1e-5, rtol=1e-5)

    # Case 3: class-dimension tiling (online logsumexp) with a masked partial
    # last class block (C=160, TC=128).
    N3, C3 = 256, 160
    logits3 = jax.random.normal(k5, (N3, C3), dtype=jnp.float32)
    targets3 = jax.random.randint(k6, (N3,), 0, C3, dtype=jnp.int32)
    loss3 = focal_loss(logits3, targets3, gamma=2.0, block_cols=128)
    jax.block_until_ready(loss3)
    ref3 = _focal_loss_ref(logits3, targets3, gamma=2.0)
    assert jnp.allclose(loss3, ref3, atol=1e-5, rtol=1e-5)

    # Case 4: non-integer gamma exercises the generic pow path.
    loss4 = focal_loss(logits2, targets2, gamma=1.5)
    jax.block_until_ready(loss4)
    ref4 = _focal_loss_ref(logits2, targets2, gamma=1.5)
    assert jnp.allclose(loss4, ref4, atol=1e-5, rtol=1e-5)

    print("KERNEL_OK")
</pallas_src>

<mosaic_0001>
module attributes {stable_mosaic.version = 11 : i64} {
  func.func @_focal_kernel_single(%arg0: i32, %arg1: memref<128x32xf32, #tpu.memory_space<vmem>>, %arg2: memref<128x1xi32, #tpu.memory_space<vmem>>, %arg3: memref<1x128xf32, #tpu.memory_space<vmem>>) attributes {dimension_semantics = [#tpu.dimension_semantics<parallel>], iteration_bounds = array<i64: 1>, scalar_prefetch = 0 : i64, scratch_operands = 0 : i64, tpu.core_type = #tpu.core_type<tc>, window_params = [{transform_indices = @transform_0, window_bounds = array<i64: 128, 32>}, {transform_indices = @transform_1, window_bounds = array<i64: 128, 1>}, {transform_indices = @transform_2, window_bounds = array<i64: 1, 128>}]} {
    %c0 = arith.constant 0 : index
    %c0_0 = arith.constant 0 : index
    %0 = vector.load %arg1[%c0, %c0_0] : memref<128x32xf32, #tpu.memory_space<vmem>>, vector<128x32xf32>
    %c0_1 = arith.constant 0 : index
    %c0_2 = arith.constant 0 : index
    %1 = vector.load %arg2[%c0_1, %c0_2] : memref<128x1xi32, #tpu.memory_space<vmem>>, vector<128x1xi32>
    %2 = tpu.iota {dimensions = array<i32: 1>} : vector<128x32xi32>
    %cst = arith.constant dense<0xFF800000> : vector<128xf32>
    %3 = vector.multi_reduction <maximumf>, %0, %cst [1] : vector<128x32xf32> to vector<128xf32>
    %4 = vector.shape_cast %3 : vector<128xf32> to vector<128x1xf32>
    %5 = vector.broadcast %4 : vector<128x1xf32> to vector<128x32xf32>
    %6 = arith.subf %0, %5 : vector<128x32xf32>
    %7 = math.exp %6 : vector<128x32xf32>
    %cst_3 = arith.constant dense<0.000000e+00> : vector<128xf32>
    %8 = vector.multi_reduction <add>, %7, %cst_3 [1] : vector<128x32xf32> to vector<128xf32>
    %9 = vector.shape_cast %8 : vector<128xf32> to vector<128x1xf32>
    %10 = vector.broadcast %1 : vector<128x1xi32> to vector<128x32xi32>
    %11 = arith.cmpi eq, %2, %10 : vector<128x32xi32>
    %cst_4 = arith.constant 0.000000e+00 : f32
    %12 = vector.broadcast %cst_4 : f32 to vector<128x32xf32>
    %13 = arith.select %11, %0, %12 : vector<128x32xi1>, vector<128x32xf32>
    %cst_5 = arith.constant dense<0.000000e+00> : vector<128xf32>
    %14 = vector.multi_reduction <add>, %13, %cst_5 [1] : vector<128x32xf32> to vector<128xf32>
    %15 = vector.shape_cast %14 : vector<128xf32> to vector<128x1xf32>
    %16 = math.log %9 : vector<128x1xf32>
    %17 = arith.addf %4, %16 : vector<128x1xf32>
    %18 = arith.subf %15, %17 : vector<128x1xf32>
    %19 = math.exp %18 : vector<128x1xf32>
    %cst_6 = arith.constant 1.000000e+00 : f32
    %20 = vector.broadcast %cst_6 : f32 to vector<128x1xf32>
    %21 = arith.subf %20, %19 : vector<128x1xf32>
    %cst_7 = arith.constant 0.000000e+00 : f32
    %cst_8 = arith.constant 1.000000e+00 : f32
    %22 = vector.broadcast %cst_7 : f32 to vector<128x1xf32>
    %23 = arith.maximumf %22, %21 : vector<128x1xf32>
    %24 = vector.broadcast %cst_8 : f32 to vector<128x1xf32>
    %25 = arith.minimumf %24, %23 : vector<128x1xf32>
    %cst_9 = arith.constant 1.000000e+00 : f32
    %26 = vector.broadcast %cst_9 : f32 to vector<128x1xf32>
    %27 = arith.mulf %26, %25 : vector<128x1xf32>
    %28 = arith.mulf %27, %25 : vector<128x1xf32>
    %29 = arith.mulf %28, %18 : vector<128x1xf32>
    %cst_10 = arith.constant 0.000000e+00 : f32
    %30 = vector.broadcast %cst_10 : f32 to vector<128x1xf32>
    %31 = arith.subf %30, %29 : vector<128x1xf32>
    %32 = vector.shape_cast %31 : vector<128x1xf32> to vector<128xf32>
    %33 = vector.shape_cast %32 : vector<128xf32> to vector<1x128xf32>
    %c0_11 = arith.constant 0 : index
    %c0_12 = arith.constant 0 : index
    %34 = vector.load %arg3[%c0_11, %c0_12] : memref<1x128xf32, #tpu.memory_space<vmem>>, vector<1x128xf32>
    tpu.vector_store %arg3[%c0_11, %c0_12], %33 {strides = array<i32>} : memref<1x128xf32, #tpu.memory_space<vmem>>, vector<1x128xf32>,
    return
  }
  func.func @transform_0(%arg0: i32) -> (i32, i32) {
    %c0_i32 = arith.constant 0 : i32
    %c0_i32_0 = arith.constant 0 : i32
    return %arg0, %c0_i32 : i32, i32
  }
  func.func @transform_1(%arg0: i32) -> (i32, i32) {
    %c0_i32 = arith.constant 0 : i32
    %c0_i32_0 = arith.constant 0 : i32
    return %arg0, %c0_i32 : i32, i32
  }
  func.func @transform_2(%arg0: i32) -> (i32, i32) {
    %c0_i32 = arith.constant 0 : i32
    %c0_i32_0 = arith.constant 0 : i32
    return %c0_i32, %arg0 : i32, i32
  }
}

</mosaic_0001>

<bundles_post_ra>
// kernel: tpu_custom_call.1
= control target key start
LH: loop header
LB: loop body
LE: loop exit
PB: predicated region body
PF: predicated region fallthrough
CT: control target
= control target key end

     0   :  { %vm46_vm0 = vcmask 261120   ;;  %v776_v6 = vmov 0   ;;  %s1293_s0 = inlined_call_operand.vmem [shape: f32[128,32], index: 0, kind: input, shape index: {}]   ;;  %s1294_s1 = inlined_call_operand.vmem [shape: s32[128,1], index: 1, kind: input, shape index: {}]   ;;  %s1295_s2 = inlined_call_operand.hbm [shape: f32[1,128], index: 2, kind: output, shape index: {}]  }
   0x1   :  { %v796_v0 = vld [vmem:[%s1293_s0 + $0x10] sm:$0xff]  ;;  %v801_v1 = vld [vmem:[%s1293_s0] sm:$0xff]  ;;  %v806_v2 = vld [vmem:[%s1293_s0 + $0x18] sm:$0xff]  ;;  %655 = vset.pattern.permute.xlu1 %v776_v6  ;;  %654 = vset.pattern.permute.xlu0 %v776_v6 }
   0x2   :  { %v53_v3 = vsel %vm46_vm0, %v796_v0, -inf  ;;  %v47_v4 = vsel %vm46_vm0, %v801_v1, -inf  ;;  %v815_v5 = vld [vmem:[%s1293_s0 + $0x8] sm:$0xff]  ;;  %v56_v7 = vsel %vm46_vm0, %v806_v2, -inf  ;;  %v829_v10 = vld [vmem:[%s1293_s0 + $0x20] sm:$0xff]  ;;  %v838_v13 = vld [vmem:[%s1293_s0 + $0x38] sm:$0xff] }
   0x3   :  { %54 = vmax.xlane.f32.xlu1 %v53_v3  ;;  %48 = vmax.xlane.f32.xlu0 %v47_v4  ;;  %v50_v8 = vsel %vm46_vm0, %v815_v5, -inf  ;;  %v824_v9 = vld [vmem:[%s1293_s0 + $0x28] sm:$0xff]  ;;  %v59_v12 = vsel %vm46_vm0, %v829_v10, -inf  ;;  %v843_v14 = vld [vmem:[%s1293_s0 + $0x30] sm:$0xff] }
   0x4   :  { %v62_v11 = vsel %vm46_vm0, %v824_v9, -inf }
   0x7   :  { %57 = vmax.xlane.f32.xlu1 %v56_v7  ;;  %51 = vmax.xlane.f32.xlu0 %v50_v8 }
   0xb   :  { %63 = vmax.xlane.f32.xlu1 %v62_v11  ;;  %60 = vmax.xlane.f32.xlu0 %v59_v12 }
   0xc   :  { %7 = vsyncpa [#allocation3], 0  ;;  %v68_v15 = vsel %vm46_vm0, %v838_v13, -inf  ;;  %v65_v16 = vsel %vm46_vm0, %v843_v14, -inf  ;;  %v852_v17 = vld [vmem:[%s1293_s0 + $0x48] sm:$0xff]  ;;  %v857_v18 = vld [vmem:[%s1293_s0 + $0x40] sm:$0xff]  ;;  %v44_v62 = vlaneseq }
   0xd   :  { %v74_v19 = vsel %vm46_vm0, %v852_v17, -inf  ;;  %v71_v20 = vsel %vm46_vm0, %v857_v18, -inf  ;;  %v866_v21 = vld [vmem:[%s1293_s0 + $0x58] sm:$0xff]  ;;  %v871_v22 = vld [vmem:[%s1293_s0 + $0x50] sm:$0xff]  ;;  %v880_v25 = vld [vmem:[%s1293_s0 + $0x68] sm:$0xff] }
   0xe   :  { %v80_v23 = vsel %vm46_vm0, %v866_v21, -inf  ;;  %v77_v24 = vsel %vm46_vm0, %v871_v22, -inf  ;;  %v885_v26 = vld [vmem:[%s1293_s0 + $0x60] sm:$0xff]  ;;  %v86_v27 = vsel %vm46_vm0, %v880_v25, -inf  ;;  %v894_v29 = vld [vmem:[%s1293_s0 + $0x78] sm:$0xff]  ;;  %v899_v30 = vld [vmem:[%s1293_s0 + $0x70] sm:$0xff] }
   0xf   :  { %69 = vmax.xlane.f32.xlu1 %v68_v15  ;;  %66 = vmax.xlane.f32.xlu0 %v65_v16  ;;  %v83_v28 = vsel %vm46_vm0, %v885_v26, -inf  ;;  %v92_v31 = vsel %vm46_vm0, %v894_v29, -inf  ;;  %v89_v32 = vsel %vm46_vm0, %v899_v30, -inf  ;;  %v29_v33 = vld [vmem:[%s1294_s1 + $0x8] sm:$0xff]  ;;  %v30_v34 = vld [vmem:[%s1294_s1 + $0x10] sm:$0xff]  ;;  %v28_v35 = vld [vmem:[%s1294_s1] sm:$0xff] }
  0x10   :  { %v31_v36 = vld [vmem:[%s1294_s1 + $0x18] sm:$0xff]  ;;  %v37_v37 = vld [vmem:[%s1294_s1 + $0x48] sm:$0xff]  ;;  %v32_v38 = vld [vmem:[%s1294_s1 + $0x20] sm:$0xff]  ;;  %v988_v7 = vand.u32 127, %v44_v62 }
  0x11   :  { %v39_v39 = vld [vmem:[%s1294_s1 + $0x58] sm:$0xff]  ;;  %v33_v40 = vld [vmem:[%s1294_s1 + $0x28] sm:$0xff]  ;;  %v34_v42 = vld [vmem:[%s1294_s1 + $0x30] sm:$0xff] }
  0x12   :  { %v41_v41 = vld [vmem:[%s1294_s1 + $0x68] sm:$0xff]  ;;  %v43_v43 = vld [vmem:[%s1294_s1 + $0x78] sm:$0xff]  ;;  %v36_v45 = vld [vmem:[%s1294_s1 + $0x40] sm:$0xff] }
  0x13   :  { %75 = vmax.xlane.f32.xlu1 %v74_v19  ;;  %72 = vmax.xlane.f32.xlu0 %v71_v20  ;;  %v35_v44 = vld [vmem:[%s1294_s1 + $0x38] sm:$0xff]  ;;  %v38_v46 = vld [vmem:[%s1294_s1 + $0x50] sm:$0xff]  ;;  %v40_v47 = vld [vmem:[%s1294_s1 + $0x60] sm:$0xff] }
  0x14   :  { %v42_v48 = vld [vmem:[%s1294_s1 + $0x70] sm:$0xff]  ;;  %s777_s1 = smov [#allocation2]  }
  0x15   :  { %s644_s16 = sshll.u32 %s777_s1, 4  ;;  %s645_s16 = int_to_ptr.vmem [resolvable:$true] %s644_s16 }
  0x16   :  { %s752_s0 = scalar_lea.vmem %s645_s16, 16  ;;  %s756_s17 = scalar_lea.vmem %s645_s16, 32 }
  0x17   :  { %81 = vmax.xlane.f32.xlu1 %v80_v23  ;;  %78 = vmax.xlane.f32.xlu0 %v77_v24  ;;  %p753_p0 = scmp.ne.s32.totalorder %s645_s16, %s752_s0  ;;  %p757_p1 = scmp.lt.s32.totalorder %s645_s16, %s645_s16 }
  0x18   :  { %p758_p2 = scmp.lt.s32.totalorder %s756_s17, %s752_s0 }
  0x1a   :  { %p759_p3 = por %p758_p2, %p757_p1 }
  0x1b   :  { %87 = vmax.xlane.f32.xlu1 %v86_v27  ;;  %84 = vmax.xlane.f32.xlu0 %v83_v28 }
  0x1c   :  { %p760_p4 = pnand %p759_p3, %p753_p0 }
  0x1f   :  { %93 = vmax.xlane.f32.xlu1 %v92_v31  ;;  %90 = vmax.xlane.f32.xlu0 %v89_v32 }
  0x30   :  { %195 = vperm.xlu1 %655, %v29_v33  }
  0x34   :  { %198 = vperm.xlu1 %655, %v30_v34  }
  0x35   :  { %192 = vperm.xlu0 %654, %v28_v35  }
  0x38   :  { %201 = vperm.xlu1 %655, %v31_v36  }
  0x39   :  { %219 = vperm.xlu0 %654, %v37_v37  }
  0x3c   :  { %204 = vperm.xlu1 %655, %v32_v38  }
  0x3d   :  { %225 = vperm.xlu0 %654, %v39_v39  }
  0x40   :  { %207 = vperm.xlu1 %655, %v33_v40  }
  0x41   :  { %231 = vperm.xlu0 %654, %v41_v41  }
  0x44   :  { %210 = vperm.xlu1 %655, %v34_v42  }
  0x45   :  { %237 = vperm.xlu0 %654, %v43_v43  }
  0x48   :  { %213 = vperm.xlu1 %655, %v35_v44  }
  0x4c   :  { %216 = vperm.xlu1 %655, %v36_v45  }
  0x50   :  { %222 = vperm.xlu1 %655, %v38_v46  }
  0x54   :  { %228 = vperm.xlu1 %655, %v40_v47  }
  0x58   :  { %234 = vperm.xlu1 %655, %v42_v48  }
  0x90   :  { %v953_v49 = vpop.xlane.xlu1 %54  ;;  %v955_v50 = vpop.xlane.xlu0 %48 }
  0x91   :  { %v95_v63 = vsub.f32 %v801_v1, %v955_v50  ;;  %v97_v12 = vsub.f32 %v796_v0, %v953_v49 }
  0x93   :  { %v111_v8 = vmul.f32 1.442695, %v95_v63  ;;  %v115_v28 = vmul.f32 1.442695, %v97_v12 }
  0x94   :  { %v957_v51 = vpop.xlane.xlu1 %57  ;;  %v959_v52 = vpop.xlane.xlu0 %51 }
  0x95   :  { %v98_v6 = vsub.f32 %v806_v2, %v957_v51  ;;  %v96_v11 = vsub.f32 %v815_v5, %v959_v52  ;;  %656 = vpow2.f32 %v111_v8 }
  0x97   :  { %v117_v19 = vmul.f32 1.442695, %v98_v6  ;;  %v113_v20 = vmul.f32 1.442695, %v96_v11 }
  0x98   :  { %v961_v53 = vpop.xlane.xlu1 %63  ;;  %v963_v54 = vpop.xlane.xlu0 %60 }
  0x99   :  { %v100_v23 = vsub.f32 %v824_v9, %v961_v53  ;;  %658 = vpow2.f32 %v117_v19  ;;  %v99_v33 = vsub.f32 %v829_v10, %v963_v54 }
  0x9a   :  { %660 = vpow2.f32 %v113_v20 }
  0x9b   :  { %v121_v34 = vmul.f32 1.442695, %v100_v23  ;;  %662 = vpow2.f32 %v115_v28  ;;  %v119_v39 = vmul.f32 1.442695, %v99_v33 }
  0x9c   :  { %v965_v55 = vpop.xlane.xlu1 %69  ;;  %v967_v56 = vpop.xlane.xlu0 %66 }
  0x9d   :  { %v102_v35 = vsub.f32 %v838_v13, %v965_v55  ;;  %v101_v40 = vsub.f32 %v843_v14, %v967_v56  ;;  %664 = vpow2.f32 %v121_v34 }
  0x9e   :  { %666 = vpow2.f32 %v119_v39 }
  0x9f   :  { %v125_v41 = vmul.f32 1.442695, %v102_v35  ;;  %v657_v45 = vpop.eup %656  ;;  %v123_v46 = vmul.f32 1.442695, %v101_v40 }
  0xa0   :  { %v969_v57 = vpop.xlane.xlu1 %75  ;;  %v971_v58 = vpop.xlane.xlu0 %72  ;;  %v143_v8 = vsel %vm46_vm0, %v657_v45, 0.0 }
  0xa1   :  { %v104_v42 = vsub.f32 %v852_v17, %v969_v57  ;;  %v103_v47 = vsub.f32 %v857_v18, %v971_v58  ;;  %668 = vpow2.f32 %v125_v41 }
  0xa2   :  { %670 = vpow2.f32 %v123_v46 }
  0xa3   :  { %v129_v48 = vmul.f32 1.442695, %v104_v42  ;;  %v659_v6 = vpop.eup %658 }
  0xa4   :  { %v973_v59 = vpop.xlane.xlu1 %81  ;;  %v975_v60 = vpop.xlane.xlu0 %78 }
  0xa5   :  { %v661_v12 = vpop.eup %660  ;;  %v105_v19 = vsub.f32 %v871_v22, %v975_v60  ;;  %672 = vpow2.f32 %v129_v48 }
  0xa8   :  { %v977_v61 = vpop.xlane.xlu1 %87  ;;  %v981_v3 = vpop.xlane.xlu0 %84 }
  0xa9   :  { %v108_v23 = vsub.f32 %v880_v25, %v977_v61 }
  0xab   :  { %v137_v33 = vmul.f32 1.442695, %v108_v23 }
  0xac   :  { %v983_v4 = vpop.xlane.xlu1 %93  ;;  %v994_v15 = vpop.xlane.xlu0 %90 }
  0xad   :  { %v110_v34 = vsub.f32 %v894_v29, %v983_v4  ;;  %v109_v41 = vsub.f32 %v899_v30, %v994_v15 }
  0xaf   :  { %v141_v40 = vmul.f32 1.442695, %v110_v34 }
  0xb0   :  { %v196_v16 = vpop.permute.xlu1 %195 }
  0xb1   :  { %vm240_vm1 = vcmp.eq.s32.totalorder %v988_v7, %v196_v16  ;;  %v127_v16 = vmul.f32 1.442695, %v103_v47 }
  0xb2   :  { %v256_v24 = vsel %vm240_vm1, %v815_v5, 0.0 }
  0xb3   :  { %v274_v27 = vsel %vm46_vm0, %v256_v24, 0.0  ;;  %v663_v24 = vpop.eup %662  ;;  %674 = vpow2.f32 %v127_v16 }
  0xb4   :  { %v199_v31 = vpop.permute.xlu1 %198  ;;  %275 = vadd.xlane.f32.xlu1 %v274_v27  ;;  %v193_v32 = vpop.permute.xlu0 %192  ;;  %v146_v27 = vsel %vm46_vm0, %v661_v12, 0.0 }
  0xb5   :  { %vm241_vm2 = vcmp.eq.s32.totalorder %v988_v7, %v199_v31  ;;  %vm239_vm3 = vcmp.eq.s32.totalorder %v988_v7, %v193_v32  ;;  %v665_v28 = vpop.eup %664  ;;  %v131_v31 = vmul.f32 1.442695, %v105_v19  ;;  %v107_v32 = vsub.f32 %v885_v26, %v981_v3 }
  0xb6   :  { %v255_v5 = vsel %vm239_vm3, %v801_v1, 0.0  ;;  %v257_v38 = vsel %vm241_vm2, %v796_v0, 0.0  ;;  %vm543_vm2 = vcmask 195712   ;;  %vm550_vm3 = vcmask 261312  }
  0xb7   :  { %v271_v36 = vsel %vm46_vm0, %v255_v5, 0.0  ;;  %v277_v44 = vsel %vm46_vm0, %v257_v38, 0.0  ;;  %v667_v5 = vpop.eup %666  ;;  %v135_v39 = vmul.f32 1.442695, %v107_v32 }
  0xb8   :  { %v202_v37 = vpop.permute.xlu1 %201  ;;  %272 = vadd.xlane.f32.xlu0 %v271_v36  ;;  %v158_v36 = vsel %vm46_vm0, %v665_v28, 0.0  ;;  %v669_v38 = vpop.eup %668 }
  0xb9   :  { %vm242_vm4 = vcmp.eq.s32.totalorder %v988_v7, %v202_v37  ;;  %v149_v37 = vsel %vm46_vm0, %v663_v24, 0.0  ;;  %v671_v42 = vpop.eup %670  ;;  %v220_v24 = vpop.permute.xlu0 %219 }
  0xba   :  { %v258_v1 = vsel %vm242_vm4, %v806_v2, 0.0  ;;  %v106_v2 = vsub.f32 %v866_v21, %v973_v59  ;;  %v161_v48 = vsel %vm46_vm0, %v671_v42, 0.0  ;;  %vm248_vm9 = vcmp.eq.s32.totalorder %v988_v7, %v220_v24 }
  0xbb   :  { %v280_v43 = vsel %vm46_vm0, %v258_v1, 0.0  ;;  %v164_v1 = vsel %vm46_vm0, %v669_v38, 0.0  ;;  %v264_v42 = vsel %vm248_vm9, %v852_v17, 0.0  ;;  %vm557_vm4 = vcmask 326912  }
  0xbc   :  { %v205_v0 = vpop.permute.xlu1 %204  ;;  %281 = vadd.xlane.f32.xlu1 %v280_v43  ;;  %278 = vadd.xlane.f32.xlu0 %v277_v44  ;;  %v133_v20 = vmul.f32 1.442695, %v106_v2  ;;  %v155_v43 = vsel %vm46_vm0, %v667_v5, 0.0  ;;  %v673_v44 = vpop.eup %672  ;;  %vm592_vm9 = vcmask 654912  }
  0xbd   :  { %vm243_vm5 = vcmp.eq.s32.totalorder %v988_v7, %v205_v0  ;;  %v139_v0 = vmul.f32 1.442695, %v109_v41  ;;  %v675_v46 = vpop.eup %674  ;;  %v170_v47 = vsel %vm46_vm0, %v673_v44, 0.0 }
  0xbe   :  { %v259_v63 = vsel %vm243_vm5, %v829_v10, 0.0  ;;  %v152_v10 = vsel %vm46_vm0, %v659_v6, 0.0  ;;  %676 = vpow2.f32 %v133_v20  ;;  %vm564_vm5 = vcmask 392512  }
  0xbf   :  { %v283_v11 = vsel %vm46_vm0, %v259_v63, 0.0  ;;  %678 = vpow2.f32 %v131_v31 }
  0xc0   :  { %144 = vadd.xlane.f32.xlu1 %v143_v8  ;;  %284 = vadd.xlane.f32.xlu0 %v283_v11  ;;  %v208_v35 = vpop.permute.xlu1 %207  ;;  %680 = vpow2.f32 %v137_v33  ;;  %v167_v11 = vsel %vm46_vm0, %v675_v46, 0.0  ;;  %v226_v33 = vpop.permute.xlu0 %225 }
  0xc1   :  { %682 = vpow2.f32 %v135_v39  ;;  %vm244_vm6 = vcmp.eq.s32.totalorder %v988_v7, %v208_v35  ;;  %vm250_vm11 = vcmp.eq.s32.totalorder %v988_v7, %v226_v33 }
  0xc2   :  { %684 = vpow2.f32 %v141_v40  ;;  %v260_v32 = vsel %vm244_vm6, %v824_v9, 0.0  ;;  %vm571_vm6 = vcmask 458112  }
  0xc3   :  { %686 = vpow2.f32 %v139_v0  ;;  %v286_v5 = vsel %vm46_vm0, %v260_v32, 0.0 }
  0xc4   :  { %153 = vadd.xlane.f32.xlu1 %v152_v10  ;;  %147 = vadd.xlane.f32.xlu0 %v146_v27  ;;  %v211_v45 = vpop.permute.xlu1 %210  ;;  %v232_v39 = vpop.permute.xlu0 %231 }
  0xc5   :  { %vm245_vm7 = vcmp.eq.s32.totalorder %v988_v7, %v211_v45  ;;  %vm252_vm13 = vcmp.eq.s32.totalorder %v988_v7, %v232_v39 }
  0xc6   :  { %v268_v46 = vsel %vm252_vm13, %v880_v25, 0.0  ;;  %vm620_vm13 = vcmask 917312  }
  0xc8   :  { %159 = vadd.xlane.f32.xlu1 %v158_v36  ;;  %150 = vadd.xlane.f32.xlu0 %v149_v37  ;;  %v677_v2 = vpop.eup %676  ;;  %v214_v63 = vpop.permute.xlu1 %213  ;;  %v261_v37 = vsel %vm245_vm7, %v843_v14, 0.0  ;;  %v298_v14 = vsel %vm46_vm0, %v264_v42, 0.0  ;;  %vm578_vm7 = vcmask 523712  }
  0xc9   :  { %v679_v6 = vpop.eup %678  ;;  %v176_v8 = vsel %vm46_vm0, %v677_v2, 0.0  ;;  %vm246_vm8 = vcmp.eq.s32.totalorder %v988_v7, %v214_v63  ;;  %v289_v38 = vsel %vm46_vm0, %v261_v37, 0.0 }
  0xca   :  { %v681_v12 = vpop.eup %680  ;;  %v173_v20 = vsel %vm46_vm0, %v679_v6, 0.0  ;;  %v262_v35 = vsel %vm246_vm8, %v838_v13, 0.0  ;;  %vm585_vm8 = vcmask 589312  }
  0xcb   :  { %v683_v16 = vpop.eup %682  ;;  %v182_v19 = vsel %vm46_vm0, %v681_v12, 0.0  ;;  %v292_v9 = vsel %vm46_vm0, %v262_v35, 0.0 }
  0xcc   :  { %165 = vadd.xlane.f32.xlu1 %v164_v1  ;;  %156 = vadd.xlane.f32.xlu0 %v155_v43  ;;  %v685_v23 = vpop.eup %684  ;;  %v217_v10 = vpop.permute.xlu1 %216  ;;  %v179_v28 = vsel %vm46_vm0, %v683_v16, 0.0  ;;  %v266_v43 = vsel %vm250_vm11, %v866_v21, 0.0  ;;  %vm606_vm11 = vcmask 786112  }
  0xcd   :  { %v188_v27 = vsel %vm46_vm0, %v685_v23, 0.0  ;;  %v687_v31 = vpop.eup %686  ;;  %vm247_vm10 = vcmp.eq.s32.totalorder %v988_v7, %v217_v10  ;;  %v304_v45 = vsel %vm46_vm0, %v266_v43, 0.0 }
  0xce   :  { %v185_v36 = vsel %vm46_vm0, %v687_v31, 0.0  ;;  %v263_v41 = vsel %vm247_vm10, %v857_v18, 0.0  ;;  %v238_v18 = vpop.permute.xlu0 %237  ;;  %vm599_vm10 = vcmask 720512  }
  0xcf   :  { %v295_v13 = vsel %vm46_vm0, %v263_v41, 0.0  ;;  %vm254_vm15 = vcmp.eq.s32.totalorder %v988_v7, %v238_v18 }
  0xd0   :  { %171 = vadd.xlane.f32.xlu1 %v170_v47  ;;  %162 = vadd.xlane.f32.xlu0 %v161_v48  ;;  %v223_v34 = vpop.permute.xlu1 %222  ;;  %v270_v48 = vsel %vm254_vm15, %v894_v29, 0.0  ;;  %vm634_vm15 = vcmask 1048512  }
  0xd1   :  { %vm249_vm12 = vcmp.eq.s32.totalorder %v988_v7, %v223_v34 }
  0xd2   :  { %v265_v1 = vsel %vm249_vm12, %v871_v22, 0.0  ;;  %v310_v22 = vsel %vm46_vm0, %v268_v46, 0.0  ;;  %vm613_vm12 = vcmask 851712  }
  0xd3   :  { %v301_v44 = vsel %vm46_vm0, %v265_v1, 0.0 }
  0xd4   :  { %177 = vadd.xlane.f32.xlu1 %v176_v8  ;;  %168 = vadd.xlane.f32.xlu0 %v167_v11  ;;  %v229_v40 = vpop.permute.xlu1 %228 }
  0xd5   :  { %vm251_vm14 = vcmp.eq.s32.totalorder %v988_v7, %v229_v40 }
  0xd6   :  { %v267_v0 = vsel %vm251_vm14, %v885_v26, 0.0  ;;  %v316_v26 = vsel %vm46_vm0, %v270_v48, 0.0  ;;  %vm627_vm14 = vcmask 982912  }
  0xd7   :  { %v307_v21 = vsel %vm46_vm0, %v267_v0, 0.0  ;;  %v1105_v0 = vadd.s32 4294967272, %v988_v7 }
  0xd8   :  { %183 = vadd.xlane.f32.xlu1 %v182_v19  ;;  %174 = vadd.xlane.f32.xlu0 %v173_v20  ;;  %v235_v17 = vpop.permute.xlu1 %234 }
  0xd9   :  { %vm253_vm1 = vcmp.eq.s32.totalorder %v988_v7, %v235_v17  ;;  %v1100_v17 = vshrl.u32 %v44_v62, 7  ;;  %v1113_v62 = vadd.s32 4294967280, %v988_v7 }
  0xda   :  { %v269_v47 = vsel %vm253_vm1, %v899_v30, 0.0 }
  0xdb   :  { %v313_v2 = vsel %vm46_vm0, %v269_v47, 0.0  ;;  %v1110_v47 = vadd.s32 4294967288, %v988_v7  ;;  %vm536_vm0 = vcmask 130112  }
  0xdc   :  { %189 = vadd.xlane.f32.xlu1 %v188_v27  ;;  %180 = vadd.xlane.f32.xlu0 %v179_v28 }
  0xe0   :  { %287 = vadd.xlane.f32.xlu1 %v286_v5  ;;  %186 = vadd.xlane.f32.xlu0 %v185_v36 }
  0xe4   :  { %293 = vadd.xlane.f32.xlu1 %v292_v9  ;;  %290 = vadd.xlane.f32.xlu0 %v289_v38 }
  0xe8   :  { %296 = vadd.xlane.f32.xlu0 %v295_v13  ;;  %299 = vadd.xlane.f32.xlu1 %v298_v14 }
  0xec   :  { %302 = vadd.xlane.f32.xlu0 %v301_v44  ;;  %305 = vadd.xlane.f32.xlu1 %v304_v45 }
  0xf0   :  { %308 = vadd.xlane.f32.xlu0 %v307_v21  ;;  %311 = vadd.xlane.f32.xlu1 %v310_v22 }
  0xf4   :  { %314 = vadd.xlane.f32.xlu0 %v313_v2  ;;  %317 = vadd.xlane.f32.xlu1 %v316_v26 }
 0x141   :  { %v276_v25 = vpop.xlane.xlu1 %275 }
 0x145   :  { %v273_v63 = vpop.xlane.xlu0 %272 }
 0x149   :  { %v282_v6 = vpop.xlane.xlu1 %281  ;;  %v279_v8 = vpop.xlane.xlu0 %278 }
 0x14d   :  { %v145_v11 = vpop.xlane.xlu1 %144  ;;  %v1084_v12 = vpop.xlane.xlu0 %284 }
 0x14e   :  { %688 = vlog2.f32 %v145_v11  ;;  %v1126_v11 = vadd.s32 4294967256, %v988_v7 }
 0x151   :  { %v154_v16 = vpop.xlane.xlu1 %153  ;;  %v148_v19 = vpop.xlane.xlu0 %147 }
 0x152   :  { %690 = vlog2.f32 %v154_v16  ;;  %v1129_v16 = vadd.s32 4294967240, %v988_v7 }
 0x153   :  { %692 = vlog2.f32 %v148_v19  ;;  %v1132_v19 = vadd.s32 4294967248, %v988_v7 }
 0x155   :  { %v160_v30 = vpop.xlane.xlu1 %159  ;;  %v151_v29 = vpop.xlane.xlu0 %150 }
 0x156   :  { %694 = vlog2.f32 %v151_v29 }
 0x157   :  { %696 = vlog2.f32 %v160_v30 }
 0x158   :  { %v689_v20 = vpop.eup %688 }
 0x159   :  { %v320_v23 = vmul.f32 0.6931472, %v689_v20  ;;  %v166_v24 = vpop.xlane.xlu1 %165  ;;  %v157_v10 = vpop.xlane.xlu0 %156 }
 0x15a   :  { %698 = vlog2.f32 %v157_v10  ;;  %v541_v10 = vsub.s32 %v1113_v62, %v1100_v17 }
 0x15b   :  { %v351_v27 = vadd.f32 %v320_v23, %v955_v50  ;;  %700 = vlog2.f32 %v166_v24  ;;  %v534_v24 = vsub.s32 %v1110_v47, %v1100_v17 }
 0x15c   :  { %v691_v28 = vpop.eup %690 }
 0x15d   :  { %v693_v31 = vpop.eup %692  ;;  %v1087_v32 = vsub.f32 %v273_v63, %v351_v27  ;;  %v326_v33 = vmul.f32 0.6931472, %v691_v28  ;;  %v172_v34 = vpop.xlane.xlu1 %171  ;;  %v1118_v63 = vadd.s32 4294967264, %v988_v7 }
 0x15e   :  { %v163_v5 = vpop.xlane.xlu0 %162  ;;  %v322_v36 = vmul.f32 0.6931472, %v693_v31 }
 0x15f   :  { %v383_v35 = vmul.f32 1.442695, %v1087_v32  ;;  %v354_v37 = vadd.f32 %v326_v33, %v957_v51  ;;  %702 = vlog2.f32 %v163_v5 }
 0x160   :  { %v352_v9 = vadd.f32 %v322_v36, %v959_v52  ;;  %v695_v38 = vpop.eup %694  ;;  %v555_v36 = vsub.s32 %v1118_v63, %v1100_v17 }
 0x161   :  { %704 = vpow2.f32 %v383_v35  ;;  %v1092_v50 = vsub.f32 %v282_v6, %v354_v37  ;;  %v178_v39 = vpop.xlane.xlu1 %177  ;;  %v324_v42 = vmul.f32 0.6931472, %v695_v38  ;;  %v697_v14 = vpop.eup %696  ;;  %v562_v37 = vsub.s32 %v1126_v11, %v1100_v17 }
 0x162   :  { %v169_v40 = vpop.xlane.xlu0 %168  ;;  %v1094_v41 = vsub.f32 %v276_v25, %v352_v9  ;;  %706 = vlog2.f32 %v172_v34  ;;  %v330_v46 = vmul.f32 0.6931472, %v697_v14  ;;  %v529_v25 = vsub.s32 %v988_v7, %v1100_v17 }
 0x163   :  { %v389_v13 = vmul.f32 1.442695, %v1092_v50  ;;  %708 = vlog2.f32 %v178_v39  ;;  %v353_v1 = vadd.f32 %v324_v42, %v953_v49  ;;  %v576_v9 = vsub.s32 %v1129_v16, %v1100_v17 }
 0x164   :  { %v385_v51 = vmul.f32 1.442695, %v1094_v41  ;;  %710 = vlog2.f32 %v169_v40  ;;  %v699_v52 = vpop.eup %698  ;;  %v569_v38 = vsub.s32 %v1132_v19, %v1100_v17  ;;  %v1152_v14 = vadd.s32 4294967224, %v988_v7 }
 0x165   :  { %712 = vpow2.f32 %v389_v13  ;;  %v184_v43 = vpop.xlane.xlu1 %183  ;;  %v1102_v44 = vsub.f32 %v279_v8, %v353_v1  ;;  %v328_v45 = vmul.f32 0.6931472, %v699_v52  ;;  %v701_v22 = vpop.eup %700  ;;  %v548_v8 = vsub.s32 %v1105_v0, %v1100_v17 }
 0x166   :  { %v175_v18 = vpop.xlane.xlu0 %174  ;;  %714 = vpow2.f32 %v385_v51  ;;  %v334_v27 = vmul.f32 0.6931472, %v701_v22  ;;  %v608_v16 = vadd.s32 4294967200, %v988_v7 }
 0x167   :  { %v387_v21 = vmul.f32 1.442695, %v1102_v44  ;;  %v355_v49 = vadd.f32 %v328_v45, %v963_v54  ;;  %716 = vlog2.f32 %v184_v43 }
 0x168   :  { %718 = vlog2.f32 %v175_v18  ;;  %v358_v52 = vadd.f32 %v334_v27, %v965_v55 }
 0x169   :  { %v190_v48 = vpop.xlane.xlu1 %189  ;;  %v703_v26 = vpop.eup %702  ;;  %720 = vpow2.f32 %v387_v21  ;;  %v1121_v54 = vsub.f32 %v1084_v12, %v355_v49  ;;  %v356_v12 = vadd.f32 %v330_v46, %v961_v53 }
 0x16a   :  { %v181_v2 = vpop.xlane.xlu0 %180  ;;  %v332_v28 = vmul.f32 0.6931472, %v703_v26 }
 0x16b   :  { %v705_v6 = vpop.eup %704  ;;  %v391_v20 = vmul.f32 1.442695, %v1121_v54  ;;  %722 = vlog2.f32 %v181_v2 }
 0x16c   :  { %v707_v30 = vpop.eup %706  ;;  %v415_v29 = vsub.f32 1.0, %v705_v6  ;;  %v357_v18 = vadd.f32 %v332_v28, %v967_v56  ;;  %v590_v56 = vsub.s32 %v1152_v14, %v1100_v17  ;;  %v622_v14 = vadd.s32 4294967184, %v988_v7 }
 0x16d   :  { %v709_v23 = vpop.eup %708  ;;  %v288_v31 = vpop.xlane.xlu1 %287  ;;  %724 = vpow2.f32 %v391_v20  ;;  %v338_v42 = vmul.f32 0.6931472, %v707_v30  ;;  %v1164_v20 = vadd.s32 4294967232, %v988_v7 }
 0x16e   :  { %v187_v33 = vpop.xlane.xlu0 %186  ;;  %v711_v34 = vpop.eup %710  ;;  %v431_v5 = vmax.f32 %v415_v29, 0.0  ;;  %v1142_v35 = vsub.f32 %v288_v31, %v356_v12  ;;  %726 = vlog2.f32 %v190_v48  ;;  %v342_v1 = vmul.f32 0.6931472, %v709_v23 }
 0x16f   :  { %v713_v53 = vpop.eup %712  ;;  %v336_v22 = vmul.f32 0.6931472, %v711_v34  ;;  %v360_v55 = vadd.f32 %v338_v42, %v969_v57 }
 0x170   :  { %v715_v39 = vpop.eup %714  ;;  %v418_v40 = vsub.f32 1.0, %v713_v53  ;;  %v393_v13 = vmul.f32 1.442695, %v1142_v35  ;;  %v447_v21 = vmin.f32 %v431_v5, 1.0 }
 0x171   :  { %v416_v51 = vsub.f32 1.0, %v715_v39  ;;  %v294_v43 = vpop.xlane.xlu1 %293  ;;  %v717_v46 = vpop.eup %716  ;;  %v359_v57 = vadd.f32 %v336_v22, %v971_v58  ;;  %v362_v39 = vadd.f32 %v342_v1, %v973_v59  ;;  %v583_v1 = vsub.s32 %v1164_v20, %v1100_v17 }
 0x172   :  { %v291_v45 = vpop.xlane.xlu0 %290  ;;  %v434_v49 = vmax.f32 %v418_v40, 0.0  ;;  %728 = vpow2.f32 %v393_v13  ;;  %v719_v48 = vpop.eup %718  ;;  %v1156_v26 = vsub.f32 %v294_v43, %v358_v52  ;;  %v463_v5 = vmul.f32 %v447_v21, %v447_v21 }
 0x173   :  { %v432_v2 = vmax.f32 %v416_v51, 0.0  ;;  %730 = vlog2.f32 %v187_v33  ;;  %v1158_v6 = vsub.f32 %v291_v45, %v357_v18  ;;  %v721_v30 = vpop.eup %720  ;;  %v346_v42 = vmul.f32 0.6931472, %v717_v46 }
 0x174   :  { %v450_v29 = vmin.f32 %v434_v49, 1.0  ;;  %v417_v23 = vsub.f32 1.0, %v721_v30  ;;  %v397_v27 = vmul.f32 1.442695, %v1156_v26  ;;  %v340_v13 = vmul.f32 0.6931472, %v719_v48 }
 0x175   :  { %v448_v12 = vmin.f32 %v432_v2, 1.0  ;;  %v395_v28 = vmul.f32 1.442695, %v1158_v6  ;;  %v300_v31 = vpop.xlane.xlu1 %299  ;;  %v723_v34 = vpop.eup %722  ;;  %v1176_v59 = vmul.f32 %v463_v5, %v1087_v32 }
 0x176   :  { %v297_v33 = vpop.xlane.xlu0 %296  ;;  %v1168_v53 = vsub.f32 %v300_v31, %v360_v55  ;;  %v433_v40 = vmax.f32 %v417_v23, 0.0  ;;  %732 = vpow2.f32 %v397_v27  ;;  %v466_v52 = vmul.f32 %v450_v29, %v450_v29 }
 0x177   :  { %v725_v51 = vpop.eup %724  ;;  %v344_v43 = vmul.f32 0.6931472, %v723_v34  ;;  %734 = vpow2.f32 %v395_v28  ;;  %v464_v49 = vmul.f32 %v448_v12, %v448_v12  ;;  %v1173_v30 = vsub.f32 %v297_v33, %v359_v57 }
 0x178   :  { %v401_v18 = vmul.f32 1.442695, %v1168_v53  ;;  %v727_v45 = vpop.eup %726  ;;  %v449_v2 = vmin.f32 %v433_v40, 1.0  ;;  %v419_v21 = vsub.f32 1.0, %v725_v51  ;;  %v364_v12 = vadd.f32 %v346_v42, %v977_v61 }
 0x179   :  { %v306_v55 = vpop.xlane.xlu1 %305  ;;  %v399_v29 = vmul.f32 1.442695, %v1173_v30  ;;  %v350_v27 = vmul.f32 0.6931472, %v727_v45  ;;  %v361_v31 = vadd.f32 %v340_v13, %v975_v60  ;;  %v363_v32 = vadd.f32 %v344_v43, %v981_v3 }
 0x17a   :  { %v303_v58 = vpop.xlane.xlu0 %302  ;;  %736 = vpow2.f32 %v401_v18  ;;  %v1180_v46 = vsub.f32 %v306_v55, %v362_v39  ;;  %v465_v22 = vmul.f32 %v449_v2, %v449_v2  ;;  %v435_v48 = vmax.f32 %v419_v21, 0.0 }
 0x17b   :  { %v1188_v34 = vmul.f32 %v466_v52, %v1092_v50  ;;  %v480_v5 = vmul.f32 %v464_v49, %v1094_v41  ;;  %738 = vpow2.f32 %v399_v29  ;;  %v1191_v61 = vsub.f32 %v303_v58, %v361_v31 }
 0x17c   :  { %v729_v23 = vpop.eup %728  ;;  %v405_v28 = vmul.f32 1.442695, %v1180_v46  ;;  %v451_v57 = vmin.f32 %v435_v48, 1.0  ;;  %v481_v60 = vmul.f32 %v465_v22, %v1102_v44  ;;  %v1199_v50 = vadd.s32 4294967208, %v988_v7 }
 0x17d   :  { %v731_v33 = vpop.eup %730  ;;  %v420_v39 = vsub.f32 1.0, %v729_v23  ;;  %v312_v40 = vpop.xlane.xlu1 %311  ;;  %v403_v52 = vmul.f32 1.442695, %v1191_v61  ;;  %v495_v49 = vsub.f32 0.0, %v1176_v59  ;;  %v498_v2 = vsub.f32 0.0, %v1188_v34 }
 0x17e   :  { %v309_v51 = vpop.xlane.xlu0 %308  ;;  %v1193_v42 = vsub.f32 %v312_v40, %v364_v12  ;;  %v467_v3 = vmul.f32 %v451_v57, %v451_v57  ;;  %v348_v41 = vmul.f32 0.6931472, %v731_v33  ;;  %740 = vpow2.f32 %v405_v28 }
 0x17f   :  { %v1195_v18 = vsub.f32 %v309_v51, %v363_v32  ;;  %v436_v13 = vmax.f32 %v420_v39, 0.0  ;;  %v496_v21 = vsub.f32 0.0, %v480_v5  ;;  %742 = vpow2.f32 %v403_v52 }
 0x180   :  { %v409_v43 = vmul.f32 1.442695, %v1193_v42  ;;  %v733_v45 = vpop.eup %732  ;;  %v366_v29 = vadd.f32 %v350_v27, %v983_v4  ;;  %v497_v12 = vsub.f32 0.0, %v481_v60  ;;  %v483_v23 = vmul.f32 %v467_v3, %v1121_v54 }
 0x181   :  { %v452_v44 = vmin.f32 %v436_v13, 1.0  ;;  %v318_v55 = vpop.xlane.xlu1 %317  ;;  %v735_v58 = vpop.eup %734  ;;  %v422_v22 = vsub.f32 1.0, %v733_v45  ;;  %v407_v48 = vmul.f32 1.442695, %v1195_v18  ;;  %v365_v5 = vadd.f32 %v348_v41, %v994_v15 }
 0x182   :  { %v421_v31 = vsub.f32 1.0, %v735_v58  ;;  %v315_v32 = vpop.xlane.xlu0 %314  ;;  %744 = vpow2.f32 %v409_v43  ;;  %v1208_v34 = vsub.f32 %v318_v55, %v366_v29  ;;  %v535_v57 = vrot.slane %v496_v21, %v534_v24 }
 0x183   :  { %v468_v28 = vmul.f32 %v452_v44, %v452_v44  ;;  %v438_v33 = vmax.f32 %v422_v22, 0.0  ;;  %746 = vpow2.f32 %v407_v48  ;;  %v1216_v51 = vsub.f32 %v315_v32, %v365_v5 }
 0x184   :  { %v737_v59 = vpop.eup %736  ;;  %v437_v27 = vmax.f32 %v421_v31, 0.0  ;;  %v413_v40 = vmul.f32 1.442695, %v1208_v34  ;;  %v542_v15 = vrot.slane %v497_v12, %v541_v10  ;;  %v499_v60 = vsub.f32 0.0, %v483_v23 }
 0x185   :  { %v484_v4 = vmul.f32 %v468_v28, %v1142_v35  ;;  %v424_v54 = vsub.f32 1.0, %v737_v59  ;;  %v454_v39 = vmin.f32 %v438_v33, 1.0  ;;  %v739_v24 = vpop.eup %738  ;;  %v411_v35 = vmul.f32 1.442695, %v1216_v51 }
 0x186   :  { %v453_v3 = vmin.f32 %v437_v27, 1.0  ;;  %748 = vpow2.f32 %v413_v40  ;;  %v530_v52 = vrot.slane %v495_v49, %v529_v25  ;;  %v423_v21 = vsub.f32 1.0, %v739_v24 }
 0x187   :  { %v440_v47 = vmax.f32 %v424_v54, 0.0  ;;  %v500_v13 = vsub.f32 0.0, %v484_v4  ;;  %v470_v41 = vmul.f32 %v454_v39, %v454_v39  ;;  %v549_v62 = vrot.slane %v498_v2, %v548_v8 }
 0x188   :  { %v469_v43 = vmul.f32 %v453_v3, %v453_v3  ;;  %v741_v44 = vpop.eup %740  ;;  %v1230_v55 = vadd.s32 4294967216, %v988_v7  ;;  %750 = vpow2.f32 %v411_v35  ;;  %v537_v58 = vsel %vm536_vm0, %v535_v57, %v530_v52 }
 0x189   :  { %v456_v45 = vmin.f32 %v440_v47, 1.0  ;;  %v486_v10 = vmul.f32 %v470_v41, %v1156_v26  ;;  %v439_v25 = vmax.f32 %v423_v21, 0.0  ;;  %v743_v49 = vpop.eup %742  ;;  %v556_v29 = vrot.slane %v499_v60, %v555_v36 }
 0x18a   :  { %v485_v22 = vmul.f32 %v469_v43, %v1158_v6  ;;  %v544_v0 = vsel %vm543_vm2, %v542_v15, %v537_v58  ;;  %v563_v8 = vrot.slane %v500_v13, %v562_v37  ;;  %v426_v26 = vsub.f32 1.0, %v741_v44 }
 0x18b   :  { %v472_v48 = vmul.f32 %v456_v45, %v456_v45  ;;  %v502_v2 = vsub.f32 0.0, %v486_v10  ;;  %v455_v23 = vmin.f32 %v439_v25, 1.0  ;;  %v425_v6 = vsub.f32 1.0, %v743_v49 }
 0x18c   :  { %v501_v12 = vsub.f32 0.0, %v485_v22  ;;  %v745_v28 = vpop.eup %744  ;;  %v604_v32 = vsub.s32 %v1199_v50, %v1100_v17  ;;  %v442_v63 = vmax.f32 %v426_v26, 0.0  ;;  %v597_v36 = vsub.s32 %v1230_v55, %v1100_v17 }
 0x18d   :  { %v488_v31 = vmul.f32 %v472_v48, %v1168_v53  ;;  %v551_v59 = vsel %vm550_vm3, %v549_v62, %v544_v0  ;;  %v471_v37 = vmul.f32 %v455_v23, %v455_v23  ;;  %v441_v33 = vmax.f32 %v425_v6, 0.0  ;;  %v747_v5 = vpop.eup %746 }
 0x18e   :  { %v570_v11 = vrot.slane %v501_v12, %v569_v38  ;;  %v558_v57 = vsel %vm557_vm4, %v556_v29, %v551_v59  ;;  %v458_v4 = vmin.f32 %v442_v63, 1.0  ;;  %v615_v53 = vadd.s32 4294967192, %v988_v7 }
 0x18f   :  { %v428_v50 = vsub.f32 1.0, %v745_v28  ;;  %v565_v27 = vsel %vm564_vm5, %v563_v8, %v558_v57  ;;  %v577_v54 = vrot.slane %v502_v2, %v576_v9  ;;  %v487_v39 = vmul.f32 %v471_v37, %v1173_v30 }
 0x190   :  { %v457_v19 = vmin.f32 %v441_v33, 1.0  ;;  %v749_v38 = vpop.eup %748  ;;  %v504_v40 = vsub.f32 0.0, %v488_v31  ;;  %v474_v15 = vmul.f32 %v458_v4, %v458_v4  ;;  %v427_v3 = vsub.f32 1.0, %v747_v5 }
 0x191   :  { %v444_v60 = vmax.f32 %v428_v50, 0.0  ;;  %v572_v47 = vsel %vm571_vm6, %v570_v11, %v565_v27  ;;  %v503_v24 = vsub.f32 0.0, %v487_v39  ;;  %v430_v41 = vsub.f32 1.0, %v749_v38 }
 0x192   :  { %v473_v13 = vmul.f32 %v457_v19, %v457_v19  ;;  %v751_v35 = vpop.eup %750  ;;  %v490_v52 = vmul.f32 %v474_v15, %v1180_v46  ;;  %v443_v9 = vmax.f32 %v427_v3, 0.0  ;;  %v591_v62 = vrot.slane %v504_v40, %v590_v56 }
 0x193   :  { %v460_v43 = vmin.f32 %v444_v60, 1.0  ;;  %v584_v30 = vrot.slane %v503_v24, %v583_v1  ;;  %v446_v21 = vmax.f32 %v430_v41, 0.0  ;;  %v429_v44 = vsub.f32 1.0, %v751_v35 }
 0x194   :  { %v489_v45 = vmul.f32 %v473_v13, %v1191_v61  ;;  %v579_v10 = vsel %vm578_vm7, %v577_v54, %v572_v47  ;;  %v459_v46 = vmin.f32 %v443_v9, 1.0  ;;  %v506_v58 = vsub.f32 0.0, %v490_v52 }
 0x195   :  { %v476_v55 = vmul.f32 %v460_v43, %v460_v43  ;;  %v462_v48 = vmin.f32 %v446_v21, 1.0  ;;  %v445_v25 = vmax.f32 %v429_v44, 0.0  ;;  %v586_v49 = vsel %vm585_vm8, %v584_v30, %v579_v10 }
 0x196   :  { %v505_v22 = vsub.f32 0.0, %v489_v45  ;;  %v475_v1 = vmul.f32 %v459_v46, %v459_v46  ;;  %v629_v61 = vadd.s32 4294967176, %v988_v7  ;;  %v618_v8 = vsub.s32 %v615_v53, %v1100_v17 }
 0x197   :  { %v492_v20 = vmul.f32 %v476_v55, %v1193_v42  ;;  %v478_v0 = vmul.f32 %v462_v48, %v462_v48  ;;  %v461_v56 = vmin.f32 %v445_v25, 1.0  ;;  %v611_v2 = vsub.s32 %v608_v16, %v1100_v17 }
 0x198   :  { %v598_v29 = vrot.slane %v505_v22, %v597_v36  ;;  %v491_v12 = vmul.f32 %v475_v1, %v1195_v18  ;;  %v605_v23 = vrot.slane %v506_v58, %v604_v32  ;;  %v593_v6 = vsel %vm592_vm9, %v591_v62, %v586_v49 }
 0x199   :  { %v508_v26 = vsub.f32 0.0, %v492_v20  ;;  %v494_v42 = vmul.f32 %v478_v0, %v1208_v34  ;;  %v477_v28 = vmul.f32 %v461_v56, %v461_v56  ;;  %v632_v36 = vsub.s32 %v629_v61, %v1100_v17 }
 0x19a   :  { %v600_v31 = vsel %vm599_vm10, %v598_v29, %v593_v6  ;;  %v507_v63 = vsub.f32 0.0, %v491_v12  ;;  %v625_v59 = vsub.s32 %v622_v14, %v1100_v17 }
 0x19b   :  { %v510_v7 = vsub.f32 0.0, %v494_v42  ;;  %v493_v11 = vmul.f32 %v477_v28, %v1216_v51  ;;  %v619_v37 = vrot.slane %v508_v26, %v618_v8  ;;  %v607_v33 = vsel %vm606_vm11, %v605_v23, %v600_v31 }
 0x19c   :  { %v612_v18 = vrot.slane %v507_v63, %v611_v2 }
 0x19d   :  { %v509_v32 = vsub.f32 0.0, %v493_v11  ;;  %v633_v5 = vrot.slane %v510_v7, %v632_v36 }
 0x19e   :  { %v614_v34 = vsel %vm613_vm12, %v612_v18, %v607_v33 }
 0x19f   :  { %v626_v57 = vrot.slane %v509_v32, %v625_v59  ;;  %v621_v4 = vsel %vm620_vm13, %v619_v37, %v614_v34 }
 0x1a1   :  { %v628_v53 = vsel %vm627_vm14, %v626_v57, %v621_v4 }
 0x1a2   :  { %v635_v50 = vsel %vm634_vm15, %v633_v5, %v628_v53 }
 0x1a3   :  { %637 = vst [vmem:[#allocation2] sm:$0x1] %v635_v50 }
 0x1a4   :  { %763 = shalt.err (!%p760_p4)
}
 0x1a5   :  { %s764_s20 = scalar_lea.hbm %s1295_s2, 16 }
 0x1a6   :  { %p765_p5 = scmp.ne.s32.totalorder %s1295_s2, %s764_s20  ;;  %p768_p6 = scmp.lt.u32.totalorder %s764_s20, %s1295_s2 }
 0x1a8   :  { %p770_p7 = pnand %p768_p6, %p765_p5 }
 0x1aa   :  { %773 = shalt.err (!%p770_p7)
}
 0x1ab   :  { %647 = dma.vmem_to_hbm [thread:$0]  %s645_s16, 16, %s1295_s2, [#allocation3]  }
 0x1ac   :  { %774 = dma.done.wait [#allocation3], 16  }
 0x1ad   :  { %775 = vsyncadd [#allocation3], 4294967280 }
 0x1ae   :  { %651 = vsyncpa [#allocation3], 1 }

</bundles_post_ra>
